<compile_context>
chip_gen: v6e
topology: v6e:2x2x1
jax: 0.10.0
libtpu: 0.0.40
codegen_flags: <defaults>
</compile_context>

<pallas_src>
import functools

import jax
import jax.numpy as jnp
from jax.experimental import pallas as pl
from jax.experimental.pallas import tpu as pltpu

LANES = 128
SUBLANES = 8


def _leaky_hinge_kernel(inp_ref, tgt_ref, out_ref, *,
                        margin, slope, n, tile_rows):
    pid = pl.program_id(0)
    last = pl.num_programs(0) - 1

    x = inp_ref[...].astype(jnp.float32)
    t = tgt_ref[...].astype(jnp.float32)
    h = margin - t * x
    h = jnp.where(h >= 0.0, h, slope * h)

    def _partial(hv):
        # (tile_rows, 128) -> (8, 128): per-lane sums land in sublane row 0,
        # zeros elsewhere, so the output store is a dense unmasked tile.
        s = jnp.sum(hv, axis=0, keepdims=True)          # cross-vreg VALU + XLU
        rowi = jax.lax.broadcasted_iota(jnp.int32, (SUBLANES, LANES), 0)
        return jnp.where(rowi == 0,
                         jnp.broadcast_to(s, (SUBLANES, LANES)),
                         0.0)

    @pl.when(pid != last)
    def _body():
        out_ref[...] = _partial(h)

    @pl.when(pid == last)
    def _tail():
        # Mask the padded / out-of-range tail of the final tile only.
        row = jax.lax.broadcasted_iota(jnp.int32, h.shape, 0)
        lane = jax.lax.broadcasted_iota(jnp.int32, h.shape, 1)
        flat = (pid * tile_rows + row) * LANES + lane
        out_ref[...] = _partial(jnp.where(flat < n, h, 0.0))


def leaky_hinge_loss(inp, tgt, *, margin=1.0, slope=0.1,
                     size_average=True, sign=1.0, tile_rows=2048):
    """Pallas-TPU implementation of LeakyHingeLoss.forward."""
    x = jnp.reshape(inp, (-1,))
    t = jnp.reshape(tgt, (-1,))
    assert x.shape == t.shape, "input/target must have the same number of elements"
    n = x.shape[0]
    assert n > 0

    # Pad (only when needed) to a multiple of 128 so we can view as (rows, 128).
    rows = pl.cdiv(n, LANES)
    n_pad = rows * LANES
    if n_pad != n:
        x = jnp.pad(x, (0, n_pad - n))
        t = jnp.pad(t, (0, n_pad - n))
    x2 = x.reshape(rows, LANES)
    t2 = t.reshape(rows, LANES)

    # Tile height: whole array if it fits in one tile (block == full dim is
    # always legal), otherwise a multiple-of-8 sublane tile.
    if rows <= tile_rows:
        tr = rows
    else:
        tr = max(SUBLANES, (tile_rows // SUBLANES) * SUBLANES)
    num_blocks = pl.cdiv(rows, tr)

    kernel = functools.partial(
        _leaky_hinge_kernel,
        margin=float(margin), slope=float(slope), n=n, tile_rows=tr,
    )

    partials = pl.pallas_call(
        kernel,
        out_shape=jax.ShapeDtypeStruct((SUBLANES * num_blocks, LANES),
                                       jnp.float32),
        grid_spec=pltpu.PrefetchScalarGridSpec(
            num_scalar_prefetch=0,
            grid=(num_blocks,),
            in_specs=[
                pl.BlockSpec((tr, LANES), lambda i: (i, 0)),
                pl.BlockSpec((tr, LANES), lambda i: (i, 0)),
            ],
            out_specs=pl.BlockSpec((SUBLANES, LANES), lambda i: (i, 0)),
        ),
        compiler_params=pltpu.CompilerParams(
            dimension_semantics=("parallel",),
        ),
    )(x2, t2)

    inv_scale = (1.0 / n) if size_average else 1.0
    total = jnp.sum(partials, dtype=jnp.float32)
    return jnp.float32(sign * inv_scale) * total


def _reference(inp, tgt, *, margin=1.0, slope=0.1, size_average=True, sign=1.0):
    x = jnp.reshape(inp, (-1,)).astype(jnp.float32)
    t = jnp.reshape(tgt, (-1,)).astype(jnp.float32)
    h = margin - t * x
    h = jnp.where(h >= 0.0, h, slope * h)
    if size_average:
        h = h / x.size
    return sign * jnp.sum(h)


if __name__ == "__main__":
    key = jax.random.PRNGKey(0)
    k1, k2, k3, k4 = jax.random.split(key, 4)

    # Typical use: logits (2, 4, 16, 16), targets ±1 flattened.
    x = jax.random.normal(k1, (2, 4, 16, 16), dtype=jnp.float32)
    target = jnp.sign(
        jax.random.normal(k2, (2 * 4 * 16 * 16,), dtype=jnp.float32))
    target = jnp.where(target == 0, 1.0, target)

    loss = leaky_hinge_loss(x, target, margin=1.0, slope=0.1,
                            size_average=True, sign=1.0)
    jax.block_until_ready(loss)
    ref = _reference(x, target, margin=1.0, slope=0.1,
                     size_average=True, sign=1.0)
    assert jnp.allclose(loss, ref, rtol=1e-5, atol=1e-6), (loss, ref)

    # Ragged size (not a multiple of 128) exercises the in-kernel tail mask.
    x2 = jax.random.normal(k3, (3, 5, 7), dtype=jnp.float32)
    t2 = jnp.where(jax.random.normal(k4, (3 * 5 * 7,)) >= 0, 1.0, -1.0)
    loss2 = leaky_hinge_loss(x2, t2, margin=0.5, slope=0.2,
                             size_average=False, sign=-1.0)
    jax.block_until_ready(loss2)
    ref2 = _reference(x2, t2, margin=0.5, slope=0.2,
                      size_average=False, sign=-1.0)
    assert jnp.allclose(loss2, ref2, rtol=1e-5, atol=1e-6), (loss2, ref2)

    # Multi-block path (forces grid > 1 with a small tile_rows override).
    x3 = jax.random.normal(k1, (64, 256), dtype=jnp.float32)
    t3 = jnp.where(jax.random.normal(k2, (64 * 256,)) >= 0, 1.0, -1.0)
    loss3 = leaky_hinge_loss(x3, t3, margin=1.0, slope=0.1,
                             size_average=True, sign=1.0, tile_rows=32)
    jax.block_until_ready(loss3)
    ref3 = _reference(x3, t3, margin=1.0, slope=0.1,
                      size_average=True, sign=1.0)
    assert jnp.allclose(loss3, ref3, rtol=1e-5, atol=1e-6), (loss3, ref3)

    print("KERNEL_OK")
</pallas_src>

<mosaic_0001>
module attributes {stable_mosaic.version = 11 : i64} {
  func.func @_leaky_hinge_kernel(%arg0: i32, %arg1: memref<16x128xf32, #tpu.memory_space<vmem>>, %arg2: memref<16x128xf32, #tpu.memory_space<vmem>>, %arg3: memref<8x128xf32, #tpu.memory_space<vmem>>) attributes {dimension_semantics = [#tpu.dimension_semantics<parallel>], iteration_bounds = array<i64: 1>, scalar_prefetch = 0 : i64, scratch_operands = 0 : i64, tpu.core_type = #tpu.core_type<tc>, window_params = [{transform_indices = @transform_0, window_bounds = array<i64: 16, 128>}, {transform_indices = @transform_1, window_bounds = array<i64: 16, 128>}, {transform_indices = @transform_2, window_bounds = array<i64: 8, 128>}]} {
    %c0 = arith.constant 0 : index
    %c0_0 = arith.constant 0 : index
    %0 = vector.load %arg1[%c0, %c0_0] : memref<16x128xf32, #tpu.memory_space<vmem>>, vector<16x128xf32>
    %c0_1 = arith.constant 0 : index
    %c0_2 = arith.constant 0 : index
    %1 = vector.load %arg2[%c0_1, %c0_2] : memref<16x128xf32, #tpu.memory_space<vmem>>, vector<16x128xf32>
    %2 = arith.mulf %1, %0 : vector<16x128xf32>
    %cst = arith.constant 1.000000e+00 : f32
    %3 = vector.broadcast %cst : f32 to vector<16x128xf32>
    %4 = arith.subf %3, %2 : vector<16x128xf32>
    %cst_3 = arith.constant 0.000000e+00 : f32
    %5 = vector.broadcast %cst_3 : f32 to vector<16x128xf32>
    %6 = arith.cmpf oge, %4, %5 : vector<16x128xf32>
    %cst_4 = arith.constant 1.000000e-01 : f32
    %7 = vector.broadcast %cst_4 : f32 to vector<16x128xf32>
    %8 = arith.mulf %7, %4 : vector<16x128xf32>
    %9 = arith.select %6, %4, %8 : vector<16x128xi1>, vector<16x128xf32>
    %c0_i32 = arith.constant 0 : i32
    %10 = arith.cmpi ne, %arg0, %c0_i32 : i32
    %11 = arith.extui %10 : i1 to i32
    %c0_i32_5 = arith.constant 0 : i32
    %12 = arith.cmpi ne, %11, %c0_i32_5 : i32
    scf.if %12 {
      %cst_8 = arith.constant dense<0.000000e+00> : vector<128xf32>
      %16 = vector.multi_reduction <add>, %9, %cst_8 [0] : vector<16x128xf32> to vector<128xf32>
      %17 = vector.shape_cast %16 : vector<128xf32> to vector<1x128xf32>
      %18 = tpu.iota {dimensions = array<i32: 0>} : vector<8x128xi32>
      %c0_i32_9 = arith.constant 0 : i32
      %19 = vector.broadcast %c0_i32_9 : i32 to vector<8x128xi32>
      %20 = arith.cmpi eq, %18, %19 : vector<8x128xi32>
      %21 = vector.shape_cast %17 : vector<1x128xf32> to vector<1x128xf32>
      %22 = vector.broadcast %21 : vector<1x128xf32> to vector<8x128xf32>
      %cst_10 = arith.constant 0.000000e+00 : f32
      %23 = vector.broadcast %cst_10 : f32 to vector<8x128xf32>
      %24 = arith.select %20, %22, %23 : vector<8x128xi1>, vector<8x128xf32>
      %c0_11 = arith.constant 0 : index
      %c0_12 = arith.constant 0 : index
      %25 = vector.load %arg3[%c0_11, %c0_12] : memref<8x128xf32, #tpu.memory_space<vmem>>, vector<8x128xf32>
      tpu.vector_store %arg3[%c0_11, %c0_12], %24 {strides = array<i32>} : memref<8x128xf32, #tpu.memory_space<vmem>>, vector<8x128xf32>,
    } else {
    }
    %c0_i32_6 = arith.constant 0 : i32
    %13 = arith.cmpi eq, %arg0, %c0_i32_6 : i32
    %14 = arith.extui %13 : i1 to i32
    %c0_i32_7 = arith.constant 0 : i32
    %15 = arith.cmpi ne, %14, %c0_i32_7 : i32
    scf.if %15 {
      %16 = tpu.iota {dimensions = array<i32: 0>} : vector<16x128xi32>
      %17 = tpu.iota {dimensions = array<i32: 1>} : vector<16x128xi32>
      %c16_i32 = arith.constant 16 : i32
      %18 = arith.muli %arg0, %c16_i32 : i32
      %19 = vector.broadcast %18 : i32 to vector<16x128xi32>
      %20 = arith.addi %19, %16 : vector<16x128xi32>
      %c128_i32 = arith.constant 128 : i32
      %21 = vector.broadcast %c128_i32 : i32 to vector<16x128xi32>
      %22 = arith.muli %20, %21 : vector<16x128xi32>
      %23 = arith.addi %22, %17 : vector<16x128xi32>
      %c2048_i32 = arith.constant 2048 : i32
      %24 = vector.broadcast %c2048_i32 : i32 to vector<16x128xi32>
      %25 = arith.cmpi slt, %23, %24 : vector<16x128xi32>
      %cst_8 = arith.constant 0.000000e+00 : f32
      %26 = vector.broadcast %cst_8 : f32 to vector<16x128xf32>
      %27 = arith.select %25, %9, %26 : vector<16x128xi1>, vector<16x128xf32>
      %cst_9 = arith.constant dense<0.000000e+00> : vector<128xf32>
      %28 = vector.multi_reduction <add>, %27, %cst_9 [0] : vector<16x128xf32> to vector<128xf32>
      %29 = vector.shape_cast %28 : vector<128xf32> to vector<1x128xf32>
      %30 = tpu.iota {dimensions = array<i32: 0>} : vector<8x128xi32>
      %c0_i32_10 = arith.constant 0 : i32
      %31 = vector.broadcast %c0_i32_10 : i32 to vector<8x128xi32>
      %32 = arith.cmpi eq, %30, %31 : vector<8x128xi32>
      %33 = vector.shape_cast %29 : vector<1x128xf32> to vector<1x128xf32>
      %34 = vector.broadcast %33 : vector<1x128xf32> to vector<8x128xf32>
      %cst_11 = arith.constant 0.000000e+00 : f32
      %35 = vector.broadcast %cst_11 : f32 to vector<8x128xf32>
      %36 = arith.select %32, %34, %35 : vector<8x128xi1>, vector<8x128xf32>
      %c0_12 = arith.constant 0 : index
      %c0_13 = arith.constant 0 : index
      %37 = vector.load %arg3[%c0_12, %c0_13] : memref<8x128xf32, #tpu.memory_space<vmem>>, vector<8x128xf32>
      tpu.vector_store %arg3[%c0_12, %c0_13], %36 {strides = array<i32>} : memref<8x128xf32, #tpu.memory_space<vmem>>, vector<8x128xf32>,
    } else {
    }
    return
  }
  func.func @transform_0(%arg0: i32) -> (i32, i32) {
    %c0_i32 = arith.constant 0 : i32
    %c0_i32_0 = arith.constant 0 : i32
    return %arg0, %c0_i32 : i32, i32
  }
  func.func @transform_1(%arg0: i32) -> (i32, i32) {
    %c0_i32 = arith.constant 0 : i32
    %c0_i32_0 = arith.constant 0 : i32
    return %arg0, %c0_i32 : i32, i32
  }
  func.func @transform_2(%arg0: i32) -> (i32, i32) {
    %c0_i32 = arith.constant 0 : i32
    %c0_i32_0 = arith.constant 0 : i32
    return %arg0, %c0_i32 : i32, i32
  }
}

</mosaic_0001>

<bundles_post_ra>
// kernel: tpu_custom_call.1
= control target key start
LH: loop header
LB: loop body
LE: loop exit
PB: predicated region body
PF: predicated region fallthrough
CT: control target
= control target key end

     0   :  { %7 = vsyncpa [#allocation3], 0  ;;  %s217_s0 = inlined_call_operand.hbm [shape: f32[16,128], index: 0, kind: input, shape index: {}]   ;;  %s218_s1 = inlined_call_operand.hbm [shape: f32[16,128], index: 1, kind: input, shape index: {}]   ;;  %s219_s2 = inlined_call_operand.hbm [shape: f32[8,128], index: 2, kind: output, shape index: {}]  }
   0x1   :  { %8 = vsyncpa [#allocation6], 0 }
   0x2   :  { %9 = vsyncpa [#allocation4], 0  ;;  %s188_s9 = smov [#allocation2]  }
   0x3   :  { %s15_s10 = sshll.u32 %s188_s9, 4  ;;  %s16_s10 = int_to_ptr.vmem [resolvable:$true] %s15_s10 }
   0x4   :  { %s130_s11 = scalar_lea.vmem %s16_s10, 256  ;;  %p135_p1 = scmp.lt.s32.totalorder %s16_s10, %s16_s10 }
   0x5   :  { %p131_p0 = scmp.ne.s32.totalorder %s16_s10, %s130_s11  ;;  %p136_p2 = scmp.lt.s32.totalorder %s130_s11, %s130_s11 }
   0x7   :  { %p137_p3 = por %p136_p2, %p135_p1 }
   0x9   :  { %p138_p4 = pnand %p137_p3, %p131_p0 }
   0xb   :  { %141 = shalt.err (!%p138_p4)
}
   0xc   :  { %s189_s12 = smov 128   ;;  %s190_s13 = smov 8  }
   0xd   :  { %21 = dma.hbm_to_vmem [thread:$0]  %s217_s0, 256, %s16_s10, [#allocation3], %s189_s12, %s189_s12, %s190_s13  }
   0xe   :  { %s191_s16 = smov [#allocation5]  }
   0xf   :  { %s27_s17 = sshll.u32 %s191_s16, 4  ;;  %s28_s17 = int_to_ptr.vmem [resolvable:$true] %s27_s17 }
  0x10   :  { %s150_s18 = scalar_lea.vmem %s28_s17, 256  ;;  %p155_p6 = scmp.lt.s32.totalorder %s28_s17, %s28_s17 }
  0x11   :  { %p151_p5 = scmp.ne.s32.totalorder %s28_s17, %s150_s18  ;;  %p156_p7 = scmp.lt.s32.totalorder %s150_s18, %s150_s18 }
  0x13   :  { %p157_p8 = por %p156_p7, %p155_p6 }
  0x15   :  { %p158_p9 = pnand %p157_p8, %p151_p5 }
  0x17   :  { %161 = shalt.err (!%p158_p9)
}
  0x18   :  { %33 = dma.hbm_to_vmem [thread:$0]  %s218_s1, 256, %s28_s17, [#allocation6], %s189_s12, %s189_s12, %s190_s13  }
  0x19   :  { %182 = dma.done.wait [#allocation3], 256  }
  0x1a   :  { %183 = vsyncadd [#allocation3], 4294967040 }
  0x1b   :  { %184 = dma.done.wait [#allocation6], 256  }
  0x1c   :  { %185 = vsyncadd [#allocation6], 4294967040  ;;  %v74_v0 = vlaneseq  ;;  %v40_v6 = vld [vmem:[#allocation2] sm:$0xff]  ;;  %v41_v7 = vld [vmem:[#allocation2 + $0x8] sm:$0xff]  ;;  %s192_s0 = smov [#allocation7]  }
  0x1d   :  { %v42_v8 = vld [vmem:[#allocation5] sm:$0xff]  ;;  %v43_v9 = vld [vmem:[#allocation5 + $0x8] sm:$0xff]  ;;  %s107_s1 = sshll.u32 %s192_s0, 4  ;;  %s108_s1 = int_to_ptr.vmem [resolvable:$true] %s107_s1 }
  0x1e   :  { %v75_v1 = vshrl.u32 %v74_v0, 7  ;;  %v78_v3 = vand.u32 127, %v74_v0  ;;  %v44_v10 = vmul.f32 %v42_v8, %v40_v6  ;;  %v45_v12 = vmul.f32 %v43_v9, %v41_v7  ;;  %s162_s21 = scalar_lea.vmem %s108_s1, 128  ;;  %p167_p11 = scmp.lt.s32.totalorder %s108_s1, %s108_s1 }
  0x1f   :  { %p163_p10 = scmp.ne.s32.totalorder %s108_s1, %s162_s21  ;;  %p168_p12 = scmp.lt.s32.totalorder %s162_s21, %s162_s21 }
  0x20   :  { %v76_v2 = vadd.s32 8, %v75_v1  ;;  %v83_v4 = vmul.u32 128, %v75_v1  ;;  %v46_v14 = vsub.f32 1.0, %v44_v10  ;;  %v47_v15 = vsub.f32 1.0, %v45_v12 }
  0x21   :  { %vm98_vm4 = vcmp.eq.s32.totalorder %v75_v1, 0  ;;  %p169_p13 = por %p168_p12, %p167_p11 }
  0x22   :  { %v84_v5 = vmul.u32 128, %v76_v2  ;;  %v85_v11 = vadd.s32 %v83_v4, %v78_v3  ;;  %vm48_vm0 = vcmp.ge.f32.partialorder %v46_v14, 0.0  ;;  %v50_v16 = vmul.f32 0.1, %v46_v14 }
  0x23   :  { %vm49_vm2 = vcmp.ge.f32.partialorder %v47_v15, 0.0  ;;  %v51_v17 = vmul.f32 0.1, %v47_v15  ;;  %p170_p0 = pnand %p169_p13, %p163_p10 }
  0x24   :  { %v86_v13 = vadd.s32 %v84_v5, %v78_v3  ;;  %vm87_vm1 = vcmp.lt.s32.totalorder %v85_v11, 2048  ;;  %v52_v18 = vsel %vm48_vm0, %v46_v14, %v50_v16 }
  0x25   :  { %v53_v19 = vsel %vm49_vm2, %v47_v15, %v51_v17  ;;  %v89_v20 = vsel %vm87_vm1, %v52_v18, 0.0 }
  0x26   :  { %vm88_vm3 = vcmp.lt.s32.totalorder %v86_v13, 2048 }
  0x27   :  { %v90_v21 = vsel %vm88_vm3, %v53_v19, 0.0 }
  0x28   :  { %v91_v22 = vadd.f32 %v90_v21, %v89_v20 }
  0x2a   :  { %v92_v23 = vrot.slane %v91_v22, 4 }
  0x2c   :  { %v93_v24 = vadd.f32 %v92_v23, %v91_v22 }
  0x2e   :  { %v94_v25 = vrot.slane %v93_v24, 2 }
  0x30   :  { %v95_v26 = vadd.f32 %v94_v25, %v93_v24 }
  0x32   :  { %v96_v27 = vrot.slane %v95_v26, 1 }
  0x34   :  { %v97_v28 = vadd.f32 %v96_v27, %v95_v26 }
  0x36   :  { %v99_v29 = vsel %vm98_vm4, %v97_v28, 0.0 }
  0x37   :  { %100 = vst [vmem:[#allocation7] sm:$0xff] %v99_v29 }
  0x38   :  { %173 = shalt.err (!%p170_p0)
}
  0x39   :  { %110 = dma.vmem_to_hbm [thread:$0]  %s108_s1, 128, %s219_s2, [#allocation4]  }
  0x3a   :  { %186 = dma.done.wait [#allocation4], 128  }
  0x3b   :  { %187 = vsyncadd [#allocation4], 4294967168 }
  0x3c   :  { %114 = vsyncpa [#allocation3], 1 }
  0x3d   :  { %115 = vsyncpa [#allocation6], 1 }
  0x3e   :  { %116 = vsyncpa [#allocation4], 1 }

</bundles_post_ra>
